<compile_context>
chip_gen: v6e
topology: v6e:2x2x1
jax: 0.10.0
libtpu: 0.0.40
codegen_flags: <defaults>
</compile_context>

<pallas_src>
import jax
import jax.numpy as jnp
from jax.experimental import pallas as pl
from jax.experimental.pallas import tpu as pltpu


def _phase_insolver_kernel(scalars_ref, doc_ref, theta_ref, out_ref):
    # scalars_ref: SMEM (3,) f32 = [p0, log2(p1), p2]
    p0 = scalars_ref[0]
    log2_p1 = scalars_ref[1]
    p2 = scalars_ref[2]

    doc = doc_ref[...].astype(jnp.float32)
    theta = theta_ref[...].astype(jnp.float32)

    # p0 * DOC + p1 ** theta + p2, with p1 ** theta == exp2(theta * log2(p1)).
    val = p0 * doc + jnp.exp2(theta * log2_p1) + p2
    out_ref[...] = (val * val).astype(out_ref.dtype)


def _round_up(x, m):
    return -(-x // m) * m


def _default_block_bytes():
    # v5-family scoped-VMEM default is 16 MiB -> 2 MiB tiles (3 arrays x 2 bufs
    # x 2 MiB = 12 MiB).  v6e/v7x default is 32 MiB -> 4 MiB tiles (24 MiB
    # footprint) to amortize the fixed per-grid-step overhead against the much
    # faster HBM (especially on v7x at 3.2 TB/s).
    try:
        kind = jax.devices()[0].device_kind.lower()
    except Exception:
        return 2 << 20
    if "v5" in kind:
        return 2 << 20
    return 4 << 20


def phase_insolver_forward(inverse_para, doc_nn, theta_nn, pvalue=0.0, *,
                           lanes=1024, target_block_bytes=None):
    """inverse_para: (3,) f32 learned scalars; doc_nn/theta_nn: same shape."""
    assert doc_nn.shape == theta_nn.shape
    orig_shape = doc_nn.shape
    dtype = doc_nn.dtype
    total = int(doc_nn.size)
    assert lanes % 128 == 0

    # --- scalars: computed once in the wrapper --------------------------------
    p0 = inverse_para[0].astype(jnp.float32)
    p1 = inverse_para[1].astype(jnp.float32)
    p2 = inverse_para[2].astype(jnp.float32)
    # p1 ** theta == exp2(theta * log2(p1)) for p1 > 0 (nn.Parameter init is
    # uniform[0,1)).  Clamp to float32 tiny so p1 == 0 still gives 1 at
    # theta == 0 (matches torch.pow) and ~0 for theta > 0.
    # TODO(synk): if training ever pushes p1 < 0, torch.pow would give NaN for
    # non-integer exponents anyway; no special handling here.
    log2_p1 = jnp.log2(jnp.maximum(p1, jnp.finfo(jnp.float32).tiny))
    scalars = jnp.stack([p0, log2_p1, p2])

    flat_doc = doc_nn.reshape(-1)
    flat_theta = theta_nn.reshape(-1)

    rem = total % lanes
    main = total - rem

    def _tail(d, t):
        v = p0 * d.astype(jnp.float32) + jnp.exp2(t.astype(jnp.float32) * log2_p1) + p2
        return (v * v).astype(dtype)

    if main == 0:
        # Sub-1024-element input: launch overhead dominates; plain jnp.
        return _tail(flat_doc, flat_theta).reshape(orig_shape)

    if target_block_bytes is None:
        target_block_bytes = _default_block_bytes()

    itemsize = jnp.dtype(dtype).itemsize
    sublane = max(8, 32 // itemsize)          # 8 f32, 16 bf16, 32 int8/fp8
    rows = main // lanes

    tile_m = max(sublane,
                 (target_block_bytes // (lanes * itemsize)) // sublane * sublane)
    if rows >= 2 * sublane:
        # Keep >= 2 grid steps so v7x's two TensorCores both get work
        # (the "parallel" grid axis is what shards across cores).
        tile_m = min(tile_m, _round_up(-(-rows // 2), sublane))
    else:
        tile_m = min(tile_m, _round_up(rows, sublane))

    grid = (pl.cdiv(rows, tile_m),)           # partial last block is masked
    data_spec = pl.BlockSpec((tile_m, lanes), lambda i: (i, 0))

    if rem == 0:
        doc2d = flat_doc.reshape(rows, lanes)           # free reshape, no copy
        theta2d = flat_theta.reshape(rows, lanes)
    else:
        doc2d = flat_doc[:main].reshape(rows, lanes)
        theta2d = flat_theta[:main].reshape(rows, lanes)

    out2d = pl.pallas_call(
        _phase_insolver_kernel,
        out_shape=jax.ShapeDtypeStruct((rows, lanes), dtype),
        grid=grid,
        in_specs=[
            pl.BlockSpec(memory_space=pltpu.MemorySpace.SMEM),  # [p0, log2p1, p2]
            data_spec,                                          # DOC tile
            data_spec,                                          # theta tile
        ],
        out_specs=data_spec,
        compiler_params=pltpu.CompilerParams(
            dimension_semantics=("parallel",)),
    )(scalars, doc2d, theta2d)

    out_flat = out2d.reshape(-1)
    if rem:
        out_flat = jnp.concatenate(
            [out_flat, _tail(flat_doc[main:], flat_theta[main:])])
    return out_flat.reshape(orig_shape)


if __name__ == "__main__":
    key = jax.random.PRNGKey(0)
    k_param, k_doc, k_theta, k_doc2, k_theta2 = jax.random.split(key, 5)

    # nn.Parameter(torch.rand((3,))) -> uniform[0, 1)
    inverse_para = jax.random.uniform(k_param, (3,), dtype=jnp.float32)

    def reference(doc, theta):
        return (inverse_para[0] * doc
                + jnp.power(inverse_para[1], theta)
                + inverse_para[2]) ** 2

    # Aligned case: 4*64*64 = 16384 elements -> zero-copy path, grid=(2,).
    shape = (4, 64, 64)
    doc_nn = jax.random.uniform(k_doc, shape, dtype=jnp.float32)
    theta_nn = jax.random.uniform(k_theta, shape, dtype=jnp.float32)
    out = jax.block_until_ready(
        phase_insolver_forward(inverse_para, doc_nn, theta_nn))
    ref = reference(doc_nn, theta_nn)
    assert out.shape == ref.shape
    assert jnp.allclose(out, ref, rtol=1e-4, atol=1e-5), "aligned case mismatch"

    # Ragged case: 17*1000 = 17000 elements -> kernel on the 1024-aligned
    # prefix, <1024-element tail handled in plain jnp.
    shape2 = (17, 1000)
    doc2 = jax.random.uniform(k_doc2, shape2, dtype=jnp.float32)
    theta2 = jax.random.uniform(k_theta2, shape2, dtype=jnp.float32)
    out2 = jax.block_until_ready(
        phase_insolver_forward(inverse_para, doc2, theta2))
    ref2 = reference(doc2, theta2)
    assert out2.shape == ref2.shape
    assert jnp.allclose(out2, ref2, rtol=1e-4, atol=1e-5), "ragged case mismatch"

    print("KERNEL_OK")
</pallas_src>

<mosaic_0001>
module attributes {stable_mosaic.version = 11 : i64} {
  func.func @_phase_insolver_kernel(%arg0: i32, %arg1: memref<3xf32, #tpu.memory_space<smem>>, %arg2: memref<8x1024xf32, #tpu.memory_space<vmem>>, %arg3: memref<8x1024xf32, #tpu.memory_space<vmem>>, %arg4: memref<8x1024xf32, #tpu.memory_space<vmem>>) attributes {dimension_semantics = [#tpu.dimension_semantics<parallel>], iteration_bounds = array<i64: 2>, scalar_prefetch = 0 : i64, scratch_operands = 0 : i64, tpu.core_type = #tpu.core_type<tc>, window_params = [{transform_indices = @transform_0, window_bounds = array<i64: 3>}, {transform_indices = @transform_1, window_bounds = array<i64: 8, 1024>}, {transform_indices = @transform_2, window_bounds = array<i64: 8, 1024>}, {transform_indices = @transform_3, window_bounds = array<i64: 8, 1024>}]} {
    %c0 = arith.constant 0 : index
    %0 = memref.load %arg1[%c0] : memref<3xf32, #tpu.memory_space<smem>>
    %c1 = arith.constant 1 : index
    %1 = memref.load %arg1[%c1] : memref<3xf32, #tpu.memory_space<smem>>
    %c2 = arith.constant 2 : index
    %2 = memref.load %arg1[%c2] : memref<3xf32, #tpu.memory_space<smem>>
    %c0_0 = arith.constant 0 : index
    %c0_1 = arith.constant 0 : index
    %3 = vector.load %arg2[%c0_0, %c0_1] : memref<8x1024xf32, #tpu.memory_space<vmem>>, vector<8x1024xf32>
    %c0_2 = arith.constant 0 : index
    %c0_3 = arith.constant 0 : index
    %4 = vector.load %arg3[%c0_2, %c0_3] : memref<8x1024xf32, #tpu.memory_space<vmem>>, vector<8x1024xf32>
    %5 = vector.broadcast %0 : f32 to vector<8x1024xf32>
    %6 = arith.mulf %5, %3 : vector<8x1024xf32>
    %7 = vector.broadcast %1 : f32 to vector<8x1024xf32>
    %8 = arith.mulf %4, %7 : vector<8x1024xf32>
    %9 = math.exp2 %8 : vector<8x1024xf32>
    %10 = arith.addf %6, %9 : vector<8x1024xf32>
    %11 = vector.broadcast %2 : f32 to vector<8x1024xf32>
    %12 = arith.addf %10, %11 : vector<8x1024xf32>
    %13 = arith.mulf %12, %12 : vector<8x1024xf32>
    %c0_4 = arith.constant 0 : index
    %c0_5 = arith.constant 0 : index
    %14 = vector.load %arg4[%c0_4, %c0_5] : memref<8x1024xf32, #tpu.memory_space<vmem>>, vector<8x1024xf32>
    tpu.vector_store %arg4[%c0_4, %c0_5], %13 {strides = array<i32>} : memref<8x1024xf32, #tpu.memory_space<vmem>>, vector<8x1024xf32>,
    return
  }
  func.func @transform_0(%arg0: i32) -> i32 {
    %c0_i32 = arith.constant 0 : i32
    %c0_i32_0 = arith.constant 0 : i32
    return %c0_i32 : i32
  }
  func.func @transform_1(%arg0: i32) -> (i32, i32) {
    %c0_i32 = arith.constant 0 : i32
    %c0_i32_0 = arith.constant 0 : i32
    return %arg0, %c0_i32 : i32, i32
  }
  func.func @transform_2(%arg0: i32) -> (i32, i32) {
    %c0_i32 = arith.constant 0 : i32
    %c0_i32_0 = arith.constant 0 : i32
    return %arg0, %c0_i32 : i32, i32
  }
  func.func @transform_3(%arg0: i32) -> (i32, i32) {
    %c0_i32 = arith.constant 0 : i32
    %c0_i32_0 = arith.constant 0 : i32
    return %arg0, %c0_i32 : i32, i32
  }
}

</mosaic_0001>

<bundles_post_ra>
// kernel: tpu_custom_call.1
= control target key start
LH: loop header
LB: loop body
LE: loop exit
PB: predicated region body
PF: predicated region fallthrough
CT: control target
= control target key end

     0   :  { %8 = vsyncpa [#allocation5], 0  ;;  %s921_s0 = inlined_call_operand.hbm [shape: f32[3], index: 0, kind: input, shape index: {}]   ;;  %s922_s1 = inlined_call_operand.hbm [shape: f32[16,1024], index: 1, kind: input, shape index: {}]   ;;  %s923_s2 = inlined_call_operand.hbm [shape: f32[16,1024], index: 2, kind: input, shape index: {}]   ;;  %s924_s3 = inlined_call_operand.hbm [shape: f32[16,1024], index: 3, kind: output, shape index: {}]  }
   0x1   :  { %9 = vsyncpa [#allocation3], 0 }
   0x2   :  { %11 = vsyncpa [#allocation3 + $0x1], 0 }
   0x3   :  { %12 = vsyncpa [#allocation8], 0 }
   0x4   :  { %14 = vsyncpa [#allocation8 + $0x1], 0 }
   0x5   :  { %15 = vsyncpa [#allocation4], 0 }
   0x6   :  { %17 = vsyncpa [#allocation4 + $0x1], 0  ;;  %s703_s12 = smov 0   ;;  %s705_s13 = smov 0  }
   0x7   :  { %s707_s14 = smov 0   ;;  %s709_s15 = smov 0  }
   0x8 LB: > { %s724_s16 = sadd.s32 4294967295, %s677_s15   ;;  %s435_s17 = sadd.s32 4294967294, %s677_s15   ;;  %s677_s15 = sphi %s709_s15, %s944_s15   ;;  %s673_s14 = sphi %s707_s14, %s943_s14   ;;  %s669_s13 = sphi %s705_s13, %s942_s13   ;;  %s665_s12 = sphi %s703_s12, %s941_s12  }
   0x9   : > { %s728_s18 = sadd.s32 1, %s677_s15   ;;  %s51_s19 = sadd.s32 1, %s673_s14 }
   0xa   : > { %s48_s20 = ssub.s32 %s677_s15, %s728_s18  ;;  %p58_p0 = scmp.ne.s32.totalorder %s673_s14, %s669_s13 }
   0xb   : > { %p49_p1 = scmp.eq.s32.totalorder %s48_s20, 0  ;;  %p64_p2 = scmp.ne.s32.totalorder %s669_s13, %s665_s12 }
   0xc   : > { %p925_p3 = scmp.eq.s32.totalorder %s724_s16, 0  ;;  %p114_p4 = scmp.eq.s32.totalorder %s724_s16, 1 }
   0xd   : > { %s740_s21 = scalar_select %p49_p1, %s673_s14, %s51_s19  }
   0xe   : > { %p744_p5 = por %p925_p3, %p64_p2  ;;  %p751_p6 = por %p114_p4, %p58_p0 }
   0xf   : > { %p120_p7 = scmp.eq.s32.totalorder %s435_s17, 1  ;;  %p436_p8 = scmp.ge.s32.totalorder %s677_s15, 1 }
  0x10   : > { %s929_s22 = scalar_select %p744_p5, 1, 0 }
  0x11   : > { %s930_s23 = scalar_select %p751_p6, 1, 0 }
  0x12   : > { %p127_p9 = scmp.lt.s32.totalorder %s677_s15, 3  ;;  %p757_p10 = por %p120_p7, %p64_p2 }
  0x13   : > { %p59_p13 = scmp.eq.s32.totalorder %s677_s15, 0  ;;  %p486_p1 = scmp.lt.s32.totalorder %s677_s15, 2 }
  0x14   : > { %s931_s24 = scalar_select %p757_p10, 1, 0 }
  0x15   : > { %p761_p11 = pnand %p436_p8, %p127_p9  ;;  %s771_s26 = sand.u32 1, %s673_s14  }
  0x16   : > { %p60_p2 = por %p59_p13, %p58_p0  ;;  %s439_s27 = sshll.u32 %s771_s26, 6 }
  0x17   : > { %s932_s25 = scalar_select %p761_p11, 1, 0 }
  0x18   : > { %p470_p4 = pneg %p761_p11  ;;  %s457_s28 = sshll.u32 %s677_s15, 10 }
  0x19   : > { %s785_s4 = scalar_lea.hbm %s922_s1, %s457_s28  ;;  %s679_s5 = smov [#allocation2]  }
  0x1a   : > { %p471_p7 = pnand %p470_p4, %p925_p3  ;;  %s153_s8 = scalar_lea.vmem [#allocation6], %s439_s27 }
  0x1b   : > { %s161_s9 = sshll.u32 %s153_s8, 4  ;;  %p792_p0 = pnand %p486_p1, %p60_p2  ;;  %s162_s9 = int_to_ptr.vmem [resolvable:$true] %s161_s9 }
  0x1c   : > { %473 = dma.hbm_to_smem (!%p471_p7), %s921_s0, 16, %s679_s5, [#allocation5]  }
  0x1d   : > { %s150_s11 = scalar_lea.sflag [#allocation3], %s771_s26  ;;  %s549_s17 = scalar_lea.hbm %s785_s4, 1024 }
  0x1e   : > { %p550_p8 = scmp.ne.s32.totalorder %s785_s4, %s549_s17  ;;  %p551_p9 = pneg %p792_p0 }
  0x1f   : > { %s554_s29 = scalar_lea.hbm %s922_s1, 2048  ;;  %p555_p1 = scmp.lt.s32.totalorder %s785_s4, %s922_s1 }
  0x20   : > { %p552_p13 = pnand %p551_p9, %p550_p8  ;;  %p556_p2 = scmp.lt.s32.totalorder %s554_s29, %s549_s17 }
  0x22   : > { %p553_p4 = pneg %p552_p13  ;;  %p557_p7 = por %p556_p2, %p555_p1 }
  0x24   : > { %p558_p12 = pnand %p557_p7, %p553_p4 }
  0x26   : > { %561 = shalt.err (!%p558_p12)
}
  0x27   : > { %s562_s6 = scalar_lea.vmem %s162_s9, 1024  ;;  %s680_s7 = smov [#allocation6]  }
  0x28   : > { %p563_p3 = scmp.ne.s32.totalorder %s162_s9, %s562_s6  ;;  %s567_s8 = sshll.u32 %s680_s7, 4  ;;  %s568_s8 = int_to_ptr.vmem [resolvable:$false] %s567_s8 }
  0x29   : > { %s569_s19 = scalar_lea.vmem %s568_s8, 2048  ;;  %p570_p13 = scmp.lt.s32.totalorder %s162_s9, %s568_s8 }
  0x2a   : > { %p565_p10 = pnand %p563_p3, %p551_p9  ;;  %p571_p6 = scmp.lt.s32.totalorder %s569_s19, %s562_s6 }
  0x2c   : > { %p566_p8 = pneg %p565_p10  ;;  %p572_p5 = por %p571_p6, %p570_p13 }
  0x2e   : > { %p573_p11 = pnand %p572_p5, %p566_p8 }
  0x30   : > { %576 = shalt.err (!%p573_p11)
}
  0x31   : > { %477 = dma.hbm_to_vmem [thread:$0]  (!%p792_p0), %s785_s4, 1024, %s162_s9, %s150_s11  }
  0x32   : > { %s822_s29 = scalar_lea.hbm %s923_s2, %s457_s28  ;;  %s172_s30 = scalar_lea.vmem [#allocation7], %s439_s27 }
  0x33   : > { %s180_s5 = sshll.u32 %s172_s30, 4  ;;  %s169_s6 = scalar_lea.sflag [#allocation8], %s771_s26  ;;  %s181_s5 = int_to_ptr.vmem [resolvable:$true] %s180_s5 }
  0x34   : > { %s577_s7 = scalar_lea.hbm %s822_s29, 1024  ;;  %s582_s11 = scalar_lea.hbm %s923_s2, 2048 }
  0x35   : > { %p578_p3 = scmp.ne.s32.totalorder %s822_s29, %s577_s7  ;;  %p583_p10 = scmp.lt.s32.totalorder %s822_s29, %s923_s2 }
  0x36   : > { %p584_p11 = scmp.lt.s32.totalorder %s582_s11, %s577_s7 }
  0x37   : > { %p580_p5 = pnand %p578_p3, %p551_p9 }
  0x38   : > { %p585_p12 = por %p584_p11, %p583_p10 }
  0x39   : > { %p581_p6 = pneg %p580_p5 }
  0x3b   : > { %p586_p4 = pnand %p585_p12, %p581_p6 }
  0x3d   : > { %589 = shalt.err (!%p586_p4)
}
  0x3e   : > { %s590_s27 = scalar_lea.vmem %s181_s5, 1024  ;;  %s681_s26 = smov [#allocation7]  }
  0x3f   : > { %p591_p1 = scmp.ne.s32.totalorder %s181_s5, %s590_s27  ;;  %s595_s19 = sshll.u32 %s681_s26, 4  ;;  %s596_s19 = int_to_ptr.vmem [resolvable:$false] %s595_s19 }
  0x40   : > { %s597_s17 = scalar_lea.vmem %s596_s19, 2048  ;;  %p598_p8 = scmp.lt.s32.totalorder %s181_s5, %s596_s19 }
  0x41   : > { %p593_p2 = pnand %p591_p1, %p551_p9  ;;  %p599_p13 = scmp.lt.s32.totalorder %s597_s17, %s590_s27 }
  0x43   : > { %p594_p7 = pneg %p593_p2  ;;  %p600_p3 = por %p599_p13, %p598_p8 }
  0x45   : > { %p601_p5 = pnand %p600_p3, %p594_p7 }
  0x47   : > { %604 = shalt.err (!%p601_p5)
}
  0x48   : > { %480 = dma.hbm_to_vmem [thread:$0]  (!%p792_p0), %s822_s29, 1024, %s181_s5, %s169_s6  }
  0x49   : > { %p934_p6 = scmp.ne.s32.totalorder %s932_s25, 0 }
  0x4a   : > { %p935_p10 = scmp.eq.s32.totalorder (!%p934_p6), %s724_s16, 0 }
  0x4b   : > { %189 = sbr.rel (%p934_p6) target bundleno = 138 (0x8a), region = 32 }
  0x50   : > { %648 = dma.done.wait (%p935_p10), [#allocation5], 16   ;;  %p936_p9 = pmov %p935_p10 }
  0x51   : > { %s852_s20 = sand.u32 1, %s669_s13   ;;  %p937_p0 = scmp.ne.s32.totalorder %s929_s22, 0 }
  0x52   : > { %650 = vsyncadd (%p936_p9), [#allocation5], 4294967280  ;;  %s855_s30 = sshll.u32 %s852_s20, 6  ;;  %s196_s10 = scalar_lea.sflag [#allocation3], %s852_s20 }
  0x53   : > { %s859_s29 = scalar_lea.vmem [#allocation6], %s855_s30 }
  0x54   : > { %652 = dma.done.wait (%p937_p0), %s196_s10, 1024  }
  0x55   : > { %654 = vsyncadd (%p937_p0), %s196_s10, 4294966272  ;;  %s205_s25 = scalar_lea.sflag [#allocation8], %s852_s20  ;;  %s208_s5 = scalar_lea.vmem [#allocation7], %s855_s30 }
  0x56   : > { %656 = dma.done.wait (%p937_p0), %s205_s25, 1024  }
  0x57   : > { %658 = vsyncadd (%p937_p0), %s205_s25, 4294966272 }
  0x58   : > { %213 = sfence }
  0x59   : > { %s450_s6 = sld [smem:[#allocation2 + $0x1]]  ;;  %v248_v0 = vld [vmem:[%s208_s5] sm:$0xff]  ;;  %v249_v1 = vld [vmem:[%s208_s5 + $0x8] sm:$0xff]  ;;  %v250_v2 = vld [vmem:[%s208_s5 + $0x10] sm:$0xff]  ;;  %s236_s4 = scalar_lea.vmem [#allocation9], %s855_s30 }
  0x5a   : > { %v251_v3 = vld [vmem:[%s208_s5 + $0x18] sm:$0xff]  ;;  %v252_v5 = vld [vmem:[%s208_s5 + $0x20] sm:$0xff]  ;;  %v253_v9 = vld [vmem:[%s208_s5 + $0x28] sm:$0xff]  ;;  %s237_s7 = sld [smem:[#allocation2]]  ;;  %s459_s9 = sshll.u32 %s724_s16, 10 }
  0x5b   : > { %v254_v11 = vld [vmem:[%s208_s5 + $0x30] sm:$0xff]  ;;  %v255_v13 = vld [vmem:[%s208_s5 + $0x38] sm:$0xff]  ;;  %s451_s22 = sld [smem:[#allocation2 + $0x2]]  ;;  %v240_v17 = vld [vmem:[%s859_s29] sm:$0xff]  ;;  %s330_s11 = sshll.u32 %s236_s4, 4  ;;  %s331_s11 = int_to_ptr.vmem [resolvable:$true] %s330_s11 }
  0x5c   : > { %v241_v19 = vld [vmem:[%s859_s29 + $0x8] sm:$0xff]  ;;  %v242_v20 = vld [vmem:[%s859_s29 + $0x10] sm:$0xff]  ;;  %v243_v22 = vld [vmem:[%s859_s29 + $0x18] sm:$0xff]  ;;  %s884_s27 = scalar_lea.hbm %s924_s3, %s459_s9  ;;  %s316_s26 = scalar_lea.sflag [#allocation4], %s852_s20 }
  0x5d   : > { %v244_v24 = vld [vmem:[%s859_s29 + $0x20] sm:$0xff]  ;;  %v245_v26 = vld [vmem:[%s859_s29 + $0x28] sm:$0xff]  ;;  %v246_v30 = vld [vmem:[%s859_s29 + $0x30] sm:$0xff]  ;;  %s605_s19 = scalar_lea.vmem %s331_s11, 1024  ;;  %p938_p12 = scmp.ne.s32.totalorder %s930_s23, 0 }
  0x5e   : > { %v247_v34 = vld [vmem:[%s859_s29 + $0x38] sm:$0xff]  ;;  %p606_p11 = scmp.ne.s32.totalorder %s331_s11, %s605_s19  ;;  %s682_s16 = smov [#allocation9]  }
  0x5f   : > { %v265_v4 = vstv %s450_s6  ;;  %s609_s17 = sshll.u32 %s682_s16, 4  ;;  %s610_s17 = int_to_ptr.vmem [resolvable:$false] %s609_s17 }
  0x60   : > { %v266_v6 = vmul.f32 %v265_v4, %v248_v0  ;;  %v267_v7 = vmul.f32 %v265_v4, %v249_v1  ;;  %v268_v8 = vmul.f32 %v265_v4, %v250_v2  ;;  %v269_v10 = vmul.f32 %v265_v4, %v251_v3  ;;  %p607_p4 = pnand %p606_p11, %p938_p12  ;;  %s611_s30 = scalar_lea.vmem %s610_s17, 2048 }
  0x61   : > { %v270_v12 = vmul.f32 %v265_v4, %v252_v5  ;;  %v271_v14 = vmul.f32 %v265_v4, %v253_v9  ;;  %v272_v15 = vmul.f32 %v265_v4, %v254_v11  ;;  %v273_v16 = vmul.f32 %v265_v4, %v255_v13  ;;  %p612_p2 = scmp.lt.s32.totalorder %s331_s11, %s610_s17  ;;  %p613_p7 = scmp.lt.s32.totalorder %s611_s30, %s605_s19 }
  0x62   : > { %522 = vpow2.f32 %v266_v6  ;;  %v256_v18 = vstv %s237_s7  ;;  %v290_v28 = vstv %s451_s22  ;;  %p608_p1 = pneg %p607_p4 }
  0x63   : > { %524 = vpow2.f32 %v267_v7  ;;  %v257_v21 = vmul.f32 %v256_v18, %v240_v17  ;;  %v258_v23 = vmul.f32 %v256_v18, %v241_v19  ;;  %v259_v25 = vmul.f32 %v256_v18, %v242_v20  ;;  %p614_p8 = por %p613_p7, %p612_p2 }
  0x64   : > { %526 = vpow2.f32 %v268_v8  ;;  %v260_v29 = vmul.f32 %v256_v18, %v243_v22  ;;  %v261_v33 = vmul.f32 %v256_v18, %v244_v24  ;;  %v262_v37 = vmul.f32 %v256_v18, %v245_v26 }
  0x65   : > { %528 = vpow2.f32 %v269_v10  ;;  %v263_v41 = vmul.f32 %v256_v18, %v246_v30  ;;  %v264_v45 = vmul.f32 %v256_v18, %v247_v34  ;;  %p615_p13 = pnand %p614_p8, %p608_p1 }
  0x66   : > { %530 = vpow2.f32 %v270_v12 }
  0x67   : > { %532 = vpow2.f32 %v271_v14 }
  0x68   : > { %534 = vpow2.f32 %v272_v15 }
  0x69   : > { %536 = vpow2.f32 %v273_v16 }
  0x6f   : > { %v523_v27 = vpop.eup %522 }
  0x70   : > { %v525_v31 = vpop.eup %524  ;;  %v282_v32 = vadd.f32 %v523_v27, %v257_v21 }
  0x71   : > { %v527_v35 = vpop.eup %526  ;;  %v283_v36 = vadd.f32 %v525_v31, %v258_v23 }
  0x72   : > { %v529_v38 = vpop.eup %528  ;;  %v291_v39 = vadd.f32 %v290_v28, %v282_v32  ;;  %v284_v40 = vadd.f32 %v527_v35, %v259_v25 }
  0x73   : > { %v531_v42 = vpop.eup %530  ;;  %v292_v43 = vadd.f32 %v290_v28, %v283_v36  ;;  %v285_v44 = vadd.f32 %v529_v38, %v260_v29 }
  0x74   : > { %v533_v46 = vpop.eup %532  ;;  %v299_v47 = vmul.f32 %v291_v39, %v291_v39  ;;  %v293_v48 = vadd.f32 %v290_v28, %v284_v40  ;;  %v286_v49 = vadd.f32 %v531_v42, %v261_v33 }
  0x75   : > { %v535_v50 = vpop.eup %534  ;;  %v300_v51 = vmul.f32 %v292_v43, %v292_v43  ;;  %v294_v52 = vadd.f32 %v290_v28, %v285_v44  ;;  %v287_v53 = vadd.f32 %v533_v46, %v262_v37 }
  0x76   : > { %v537_v54 = vpop.eup %536  ;;  %307 = vst [vmem:[%s236_s4] sm:$0xff] %v299_v47  ;;  %v301_v55 = vmul.f32 %v293_v48, %v293_v48  ;;  %v295_v56 = vadd.f32 %v290_v28, %v286_v49  ;;  %v288_v57 = vadd.f32 %v535_v50, %v263_v41 }
  0x77   : > { %308 = vst [vmem:[%s236_s4 + $0x8] sm:$0xff] %v300_v51  ;;  %v302_v58 = vmul.f32 %v294_v52, %v294_v52  ;;  %v296_v59 = vadd.f32 %v290_v28, %v287_v53  ;;  %v289_v60 = vadd.f32 %v537_v54, %v264_v45 }
  0x78   : > { %309 = vst [vmem:[%s236_s4 + $0x10] sm:$0xff] %v301_v55  ;;  %v303_v61 = vmul.f32 %v295_v56, %v295_v56  ;;  %v297_v62 = vadd.f32 %v290_v28, %v288_v57 }
  0x79   : > { %310 = vst [vmem:[%s236_s4 + $0x18] sm:$0xff] %v302_v58  ;;  %v304_v63 = vmul.f32 %v296_v59, %v296_v59  ;;  %v298_v0 = vadd.f32 %v290_v28, %v289_v60 }
  0x7a   : > { %311 = vst [vmem:[%s236_s4 + $0x20] sm:$0xff] %v303_v61  ;;  %v305_v1 = vmul.f32 %v297_v62, %v297_v62 }
  0x7b   : > { %312 = vst [vmem:[%s236_s4 + $0x28] sm:$0xff] %v304_v63  ;;  %v306_v2 = vmul.f32 %v298_v0, %v298_v0 }
  0x7c   : > { %313 = vst [vmem:[%s236_s4 + $0x30] sm:$0xff] %v305_v1 }
  0x7d   : > { %314 = vst [vmem:[%s236_s4 + $0x38] sm:$0xff] %v306_v2 }
  0x7e   : > { %618 = shalt.err (!%p615_p13)
}
  0x7f   : > { %s619_s10 = scalar_lea.hbm %s884_s27, 1024  ;;  %s623_s25 = scalar_lea.hbm %s924_s3, 2048 }
  0x80   : > { %p620_p3 = scmp.ne.s32.totalorder %s884_s27, %s619_s10  ;;  %p624_p10 = scmp.lt.s32.totalorder %s884_s27, %s924_s3 }
  0x81   : > { %p625_p9 = scmp.lt.s32.totalorder %s623_s25, %s619_s10 }
  0x82   : > { %p621_p5 = pnand %p620_p3, %p938_p12 }
  0x83   : > { %p626_p0 = por %p625_p9, %p624_p10 }
  0x84   : > { %p622_p6 = pneg %p621_p5 }
  0x86   : > { %p627_p11 = pnand %p626_p0, %p622_p6 }
  0x88   : > { %630 = shalt.err (!%p627_p11)
}
  0x89   : > { %468 = dma.vmem_to_hbm [thread:$0]  (%p938_p12), %s331_s11, 1024, %s884_s27, %s316_s26  }
  0x8a PF: > { %s342_s7 = sand.u32 1, %s665_s12   ;;  %p939_p4 = scmp.ne.s32.totalorder %s931_s24, 0 }
  0x8b   : > { %p940_p1 = scmp.ge.s32.totalorder %s677_s15, 2  ;;  %s343_s22 = scalar_lea.sflag [#allocation4], %s342_s7 }
  0x8d   : > { %p482_p2 = pnand %p940_p1, %p939_p4 }
  0x8f   : > { %p483_p7 = pneg %p482_p2 }
  0x91   : > { %660 = dma.done.wait (%p483_p7), %s343_s22, 1024  }
  0x92   : > { %662 = vsyncadd (%p483_p7), %s343_s22, 4294966272  ;;  %p20_p8 = scmp.ge.s32.totalorder %s728_s18, 4   ;;  %s941_s12 = smov %s669_s13 }
  0x93   : > { %s942_s13 = smov %s673_s14  ;;  %s943_s14 = smov %s740_s21 }
  0x94   : > { %s944_s15 = smov %s728_s18  ;;  %22 = sbr.rel (!%p20_p8) target bundleno = 8 (0x8), region = 95 }
  0x99   :  { %348 = vsyncpa [#allocation3], 1 }
  0x9a   :  { %350 = vsyncpa [#allocation3 + $0x1], 1 }
  0x9b   :  { %351 = vsyncpa [#allocation8], 1 }
  0x9c   :  { %353 = vsyncpa [#allocation8 + $0x1], 1 }
  0x9d   :  { %354 = vsyncpa [#allocation4], 1 }
  0x9e   :  { %356 = vsyncpa [#allocation4 + $0x1], 1 }
  0x9f   :  { %357 = vsyncpa [#allocation5], 1 }
  0xa0   :  { %359 = vsyncpa [#allocation5 + $0x1], 1 }

</bundles_post_ra>
